<compile_context>
chip_gen: v5e
topology: v5e:2x2
jax: 0.10.0
libtpu: 0.0.40
codegen_flags: <defaults>
</compile_context>

<pallas_src>
import jax
import jax.numpy as jnp
from jax.experimental import pallas as pl
from jax.experimental.pallas import tpu as pltpu

_LANE = 128  # vreg lane width; batch (lane axis) blocks must be multiples of it


def _round_up(x: int, m: int) -> int:
    return (x + m - 1) // m * m


def _single_buffer_kwargs():
    """kwargs requesting a single VMEM buffer for constant-index blocks.

    Returns {} gracefully if this JAX version lacks pipeline_mode / Buffered.
    """
    if not hasattr(pl, "Buffered"):
        return {}
    try:
        pl.BlockSpec((8, 128), lambda i: (0, 0), pipeline_mode=pl.Buffered(1))
        return {"pipeline_mode": pl.Buffered(1)}
    except Exception:
        return {}


def _make_mlp_kernel(num_linear: int, slope: float, precision):
    """Builds a kernel with refs = (xT, w0, b0, w1, b1, ..., outT)."""

    def kernel(*refs):
        xT_ref = refs[0]
        oT_ref = refs[-1]
        wb = refs[1:-1]

        h = xT_ref[...]  # (in_dim, batch_tile): batch on lanes (lane-dense)
        for i in range(num_linear):
            w = wb[2 * i][...]                           # (out, in), PyTorch orientation
            b = wb[2 * i + 1][...].astype(jnp.float32)   # (out, 1) -> broadcasts over lanes
            # Matmul in the parameter dtype (native bf16 MXU path when params
            # are bf16), f32 accumulation on the MXU.
            h = jnp.dot(w, h.astype(w.dtype),
                        preferred_element_type=jnp.float32,
                        precision=precision) + b
            if i < num_linear - 1:  # LeakyReLU after every layer except the last
                h = jnp.where(h >= 0, h, slope * h)
        oT_ref[...] = h.astype(oT_ref.dtype)

    return kernel


def mlp_forward(x, params, *, leaky_relu_slope=0.2, batch_tile=None,
                precision=None, transposed_io=False):
    """Run the fused MLP kernel.

    x:       [..., input_dim]  (or [input_dim, B] when transposed_io=True)
    params:  list of (W, b) with W: [out, in] (PyTorch nn.Linear orientation),
             b: [out].  Computes y = x @ W.T + b with LeakyReLU(slope) between
             layers, matching nn.Sequential(Linear, LeakyReLU, ..., Linear).
    """
    num_linear = len(params)
    in_dim = params[0][0].shape[1]
    out_dim = params[-1][0].shape[0]
    dtype = x.dtype

    for li, (w, b) in enumerate(params):
        if w.dtype != dtype or b.dtype != dtype:
            raise ValueError(
                f"dtype mismatch: x is {dtype} but layer {li} params are "
                f"({w.dtype}, {b.dtype}); cast explicitly before calling "
                f"(prefer bf16 end-to-end on v6e/v7x).")

    if transposed_io:
        x_t = x                          # caller already provides (in_dim, B)
        lead_shape = None
    else:
        lead_shape = x.shape[:-1]
        x_t = x.reshape(-1, in_dim).T    # (in_dim, B) -- layout plumbing only
    B = x_t.shape[1]

    # --- batch-tile selection (batch is the lane axis) -----------------------
    if batch_tile is None:
        batch_tile = 8192  # TODO(synk): expose as a per-generation tuning knob
    bt = min(batch_tile, B)
    if B >= 2 * _LANE:
        # v7x has 2 TensorCores; the "parallel" grid axis shards across them,
        # so keep at least 2 grid steps when B is large enough.
        bt = min(bt, _round_up(pl.cdiv(B, 2), _LANE))
    if bt < B:
        bt = max(_LANE, (bt // _LANE) * _LANE)  # lane-axis blocks: multiple of 128
    if bt >= B:
        bt = B                                  # single block equal to full dims
    grid = (pl.cdiv(B, bt),)                    # ragged last block; OOB writes masked

    wb_buf = _single_buffer_kwargs()

    flat_args = []
    in_specs = [pl.BlockSpec((in_dim, bt), lambda i: (0, i))]
    for (w, b) in params:
        b2d = b.reshape(-1, 1)  # (out, 1): broadcasts across the lane (batch) axis
        flat_args += [w, b2d]
        # Constant block index -> weights/biases stay resident; single buffer.
        in_specs += [
            pl.BlockSpec(w.shape, lambda i: (0, 0), **wb_buf),
            pl.BlockSpec(b2d.shape, lambda i: (0, 0), **wb_buf),
        ]

    flops = 2 * B * sum(w.shape[0] * w.shape[1] for w, _ in params)
    bytes_accessed = (
        B * (in_dim + out_dim) * dtype.itemsize
        + sum(w.size * w.dtype.itemsize + b.size * b.dtype.itemsize
              for w, b in params))
    cost = pl.CostEstimate(flops=flops, transcendentals=0,
                           bytes_accessed=bytes_accessed)

    kernel = _make_mlp_kernel(num_linear, leaky_relu_slope, precision)

    out_t = pl.pallas_call(
        kernel,
        out_shape=jax.ShapeDtypeStruct((out_dim, B), dtype),
        grid=grid,
        in_specs=in_specs,
        out_specs=pl.BlockSpec((out_dim, bt), lambda i: (0, i)),
        compiler_params=pltpu.CompilerParams(dimension_semantics=("parallel",)),
        cost_estimate=cost,
    )(x_t, *flat_args)

    if transposed_io:
        return out_t                    # (out_dim, B), lane-dense
    return out_t.T.reshape(*lead_shape, out_dim)


def init_mlp_params(key, input_dim, hidden_dim, output_dim, num_layers,
                    dtype=jnp.float32):
    """Parameter init matching the PyTorch module's Linear shapes.

    num_layers hidden Linear+LeakyReLU blocks followed by a final Linear.
    Returns list of (W[out, in], b[out])  (PyTorch nn.Linear orientation).
    """
    dims = []
    for l in range(num_layers):
        d_in = input_dim if l == 0 else hidden_dim
        dims.append((d_in, hidden_dim))
    dims.append((hidden_dim, output_dim))

    params = []
    for (d_in, d_out) in dims:
        key, kw, kb = jax.random.split(key, 3)
        bound = 1.0 / (d_in ** 0.5)  # matches nn.Linear default init scale
        w = jax.random.uniform(kw, (d_out, d_in), jnp.float32, -bound, bound)
        b = jax.random.uniform(kb, (d_out,), jnp.float32, -bound, bound)
        params.append((w.astype(dtype), b.astype(dtype)))
    return params


def mlp_reference(x, params, leaky_relu_slope=0.2):
    """Pure-JAX reference for correctness check."""
    in_dim = params[0][0].shape[1]
    h = x.astype(jnp.float32).reshape(-1, in_dim)
    n = len(params)
    for i, (w, b) in enumerate(params):
        h = h @ w.astype(jnp.float32).T + b.astype(jnp.float32)
        if i < n - 1:
            h = jnp.where(h >= 0, h, leaky_relu_slope * h)
    return h.reshape(*x.shape[:-1], -1)


if __name__ == "__main__":
    # Small shapes consistent with the module's forward: x is [batch, input_dim].
    batch = 16
    input_dim = 8
    hidden_dim = 32
    output_dim = 8
    num_layers = 2  # two hidden Linear+LeakyReLU blocks, then a final Linear

    key = jax.random.PRNGKey(0)
    key_x, key_p, key_x2 = jax.random.split(key, 3)
    x = jax.random.normal(key_x, (batch, input_dim), jnp.float32)
    params = init_mlp_params(key_p, input_dim, hidden_dim, output_dim, num_layers)

    ref = mlp_reference(x, params, leaky_relu_slope=0.2)

    # --- f32 path, single full block (grid=(1,)) ------------------------------
    out = jax.block_until_ready(mlp_forward(x, params, leaky_relu_slope=0.2))
    assert out.shape == (batch, output_dim)
    assert jnp.allclose(out, ref, atol=1e-5, rtol=1e-5), "f32 mismatch vs reference"

    # --- multi-step grid with ragged last block (no wrapper-side pad copy) ----
    B2 = 300
    x2 = jax.random.normal(key_x2, (B2, input_dim), jnp.float32)
    ref2 = mlp_reference(x2, params, leaky_relu_slope=0.2)
    out2 = jax.block_until_ready(
        mlp_forward(x2, params, leaky_relu_slope=0.2, batch_tile=128))
    assert out2.shape == (B2, output_dim)
    assert jnp.allclose(out2, ref2, atol=1e-5, rtol=1e-5), (
        "ragged multi-block mismatch vs reference")

    # --- bf16 fast-MXU path (loose tolerance vs. f32 reference) ---------------
    x_bf16 = x.astype(jnp.bfloat16)
    params_bf16 = [(w.astype(jnp.bfloat16), b.astype(jnp.bfloat16))
                   for w, b in params]
    out_bf16 = jax.block_until_ready(
        mlp_forward(x_bf16, params_bf16, leaky_relu_slope=0.2))
    assert out_bf16.shape == (batch, output_dim)
    assert jnp.allclose(out_bf16.astype(jnp.float32), ref, atol=1e-1, rtol=1e-1), (
        "bf16 mismatch vs reference (loose tolerance)")

    print("KERNEL_OK")
</pallas_src>

<mosaic_0001>
module attributes {stable_mosaic.version = 11 : i64} {
  func.func @kernel(%arg0: i32, %arg1: memref<8x16xf32, #tpu.memory_space<vmem>>, %arg2: memref<32x8xf32, #tpu.memory_space<vmem>>, %arg3: memref<32x1xf32, #tpu.memory_space<vmem>>, %arg4: memref<32x32xf32, #tpu.memory_space<vmem>>, %arg5: memref<32x1xf32, #tpu.memory_space<vmem>>, %arg6: memref<8x32xf32, #tpu.memory_space<vmem>>, %arg7: memref<8x1xf32, #tpu.memory_space<vmem>>, %arg8: memref<8x16xf32, #tpu.memory_space<vmem>>) attributes {dimension_semantics = [#tpu.dimension_semantics<parallel>], iteration_bounds = array<i64: 1>, scalar_prefetch = 0 : i64, scratch_operands = 0 : i64, tpu.core_type = #tpu.core_type<tc>, window_params = [{transform_indices = @transform_0, window_bounds = array<i64: 8, 16>}, {pipeline_mode = #tpu.pipeline_mode<synchronous>, transform_indices = @transform_1, window_bounds = array<i64: 32, 8>}, {pipeline_mode = #tpu.pipeline_mode<synchronous>, transform_indices = @transform_2, window_bounds = array<i64: 32, 1>}, {pipeline_mode = #tpu.pipeline_mode<synchronous>, transform_indices = @transform_3, window_bounds = array<i64: 32, 32>}, {pipeline_mode = #tpu.pipeline_mode<synchronous>, transform_indices = @transform_4, window_bounds = array<i64: 32, 1>}, {pipeline_mode = #tpu.pipeline_mode<synchronous>, transform_indices = @transform_5, window_bounds = array<i64: 8, 32>}, {pipeline_mode = #tpu.pipeline_mode<synchronous>, transform_indices = @transform_6, window_bounds = array<i64: 8, 1>}, {transform_indices = @transform_7, window_bounds = array<i64: 8, 16>}]} {
    %c0 = arith.constant 0 : index
    %c0_0 = arith.constant 0 : index
    %0 = vector.load %arg1[%c0, %c0_0] : memref<8x16xf32, #tpu.memory_space<vmem>>, vector<8x16xf32>
    %c0_1 = arith.constant 0 : index
    %c0_2 = arith.constant 0 : index
    %1 = vector.load %arg2[%c0_1, %c0_2] : memref<32x8xf32, #tpu.memory_space<vmem>>, vector<32x8xf32>
    %c0_3 = arith.constant 0 : index
    %c0_4 = arith.constant 0 : index
    %2 = vector.load %arg3[%c0_3, %c0_4] : memref<32x1xf32, #tpu.memory_space<vmem>>, vector<32x1xf32>
    %cst = arith.constant dense<0.000000e+00> : vector<32x16xf32>
    %3 = tpu.matmul %1, %0, %cst {dimension_numbers = #tpu.dot_dimension_numbers<[1], [0], [0], [1], [0, 0, 1, 1], [], []>} : vector<32x8xf32>, vector<8x16xf32>, vector<32x16xf32> -> vector<32x16xf32>
    %4 = vector.broadcast %2 : vector<32x1xf32> to vector<32x16xf32>
    %5 = arith.addf %3, %4 : vector<32x16xf32>
    %cst_5 = arith.constant 0.000000e+00 : f32
    %6 = vector.broadcast %cst_5 : f32 to vector<32x16xf32>
    %7 = arith.cmpf oge, %5, %6 : vector<32x16xf32>
    %cst_6 = arith.constant 2.000000e-01 : f32
    %8 = vector.broadcast %cst_6 : f32 to vector<32x16xf32>
    %9 = arith.mulf %8, %5 : vector<32x16xf32>
    %10 = arith.select %7, %5, %9 : vector<32x16xi1>, vector<32x16xf32>
    %c0_7 = arith.constant 0 : index
    %c0_8 = arith.constant 0 : index
    %11 = vector.load %arg4[%c0_7, %c0_8] : memref<32x32xf32, #tpu.memory_space<vmem>>, vector<32x32xf32>
    %c0_9 = arith.constant 0 : index
    %c0_10 = arith.constant 0 : index
    %12 = vector.load %arg5[%c0_9, %c0_10] : memref<32x1xf32, #tpu.memory_space<vmem>>, vector<32x1xf32>
    %cst_11 = arith.constant dense<0.000000e+00> : vector<32x16xf32>
    %13 = tpu.matmul %11, %10, %cst_11 {dimension_numbers = #tpu.dot_dimension_numbers<[1], [0], [0], [1], [0, 0, 1, 1], [], []>} : vector<32x32xf32>, vector<32x16xf32>, vector<32x16xf32> -> vector<32x16xf32>
    %14 = vector.broadcast %12 : vector<32x1xf32> to vector<32x16xf32>
    %15 = arith.addf %13, %14 : vector<32x16xf32>
    %cst_12 = arith.constant 0.000000e+00 : f32
    %16 = vector.broadcast %cst_12 : f32 to vector<32x16xf32>
    %17 = arith.cmpf oge, %15, %16 : vector<32x16xf32>
    %cst_13 = arith.constant 2.000000e-01 : f32
    %18 = vector.broadcast %cst_13 : f32 to vector<32x16xf32>
    %19 = arith.mulf %18, %15 : vector<32x16xf32>
    %20 = arith.select %17, %15, %19 : vector<32x16xi1>, vector<32x16xf32>
    %c0_14 = arith.constant 0 : index
    %c0_15 = arith.constant 0 : index
    %21 = vector.load %arg6[%c0_14, %c0_15] : memref<8x32xf32, #tpu.memory_space<vmem>>, vector<8x32xf32>
    %c0_16 = arith.constant 0 : index
    %c0_17 = arith.constant 0 : index
    %22 = vector.load %arg7[%c0_16, %c0_17] : memref<8x1xf32, #tpu.memory_space<vmem>>, vector<8x1xf32>
    %cst_18 = arith.constant dense<0.000000e+00> : vector<8x16xf32>
    %23 = tpu.matmul %21, %20, %cst_18 {dimension_numbers = #tpu.dot_dimension_numbers<[1], [0], [0], [1], [0, 0, 1, 1], [], []>} : vector<8x32xf32>, vector<32x16xf32>, vector<8x16xf32> -> vector<8x16xf32>
    %24 = vector.broadcast %22 : vector<8x1xf32> to vector<8x16xf32>
    %25 = arith.addf %23, %24 : vector<8x16xf32>
    %c0_19 = arith.constant 0 : index
    %c0_20 = arith.constant 0 : index
    %26 = vector.load %arg8[%c0_19, %c0_20] : memref<8x16xf32, #tpu.memory_space<vmem>>, vector<8x16xf32>
    tpu.vector_store %arg8[%c0_19, %c0_20], %25 {strides = array<i32>} : memref<8x16xf32, #tpu.memory_space<vmem>>, vector<8x16xf32>,
    return
  }
  func.func @transform_0(%arg0: i32) -> (i32, i32) {
    %c0_i32 = arith.constant 0 : i32
    %c0_i32_0 = arith.constant 0 : i32
    return %c0_i32, %arg0 : i32, i32
  }
  func.func @transform_1(%arg0: i32) -> (i32, i32) {
    %c0_i32 = arith.constant 0 : i32
    %c0_i32_0 = arith.constant 0 : i32
    %c0_i32_1 = arith.constant 0 : i32
    return %c0_i32, %c0_i32_0 : i32, i32
  }
  func.func @transform_2(%arg0: i32) -> (i32, i32) {
    %c0_i32 = arith.constant 0 : i32
    %c0_i32_0 = arith.constant 0 : i32
    %c0_i32_1 = arith.constant 0 : i32
    return %c0_i32, %c0_i32_0 : i32, i32
  }
  func.func @transform_3(%arg0: i32) -> (i32, i32) {
    %c0_i32 = arith.constant 0 : i32
    %c0_i32_0 = arith.constant 0 : i32
    %c0_i32_1 = arith.constant 0 : i32
    return %c0_i32, %c0_i32_0 : i32, i32
  }
  func.func @transform_4(%arg0: i32) -> (i32, i32) {
    %c0_i32 = arith.constant 0 : i32
    %c0_i32_0 = arith.constant 0 : i32
    %c0_i32_1 = arith.constant 0 : i32
    return %c0_i32, %c0_i32_0 : i32, i32
  }
  func.func @transform_5(%arg0: i32) -> (i32, i32) {
    %c0_i32 = arith.constant 0 : i32
    %c0_i32_0 = arith.constant 0 : i32
    %c0_i32_1 = arith.constant 0 : i32
    return %c0_i32, %c0_i32_0 : i32, i32
  }
  func.func @transform_6(%arg0: i32) -> (i32, i32) {
    %c0_i32 = arith.constant 0 : i32
    %c0_i32_0 = arith.constant 0 : i32
    %c0_i32_1 = arith.constant 0 : i32
    return %c0_i32, %c0_i32_0 : i32, i32
  }
  func.func @transform_7(%arg0: i32) -> (i32, i32) {
    %c0_i32 = arith.constant 0 : i32
    %c0_i32_0 = arith.constant 0 : i32
    return %c0_i32, %arg0 : i32, i32
  }
}

</mosaic_0001>

<bundles_post_ra>
// kernel: tpu_custom_call.1
= control target key start
LH: loop header
LB: loop body
LE: loop exit
PB: predicated region body
PF: predicated region fallthrough
CT: control target
= control target key end

     0   :  { %vm56_vm0 = vcmask 64512   ;;  %v285_v5 = vmov 0   ;;  %s396_s0 = inlined_call_operand.vmem [shape: f32[8,16], index: 0, kind: input, shape index: {}]   ;;  %s397_s1 = inlined_call_operand.vmem [shape: f32[32,8], index: 1, kind: input, shape index: {}]   ;;  %s398_s2 = inlined_call_operand.vmem [shape: f32[32,1], index: 2, kind: input, shape index: {}]   ;;  %s399_s3 = inlined_call_operand.vmem [shape: f32[32,32], index: 3, kind: input, shape index: {}]   ;;  %s400_s4 = inlined_call_operand.vmem [shape: f32[32,1], index: 4, kind: input, shape index: {}]   ;;  %s401_s5 = inlined_call_operand.vmem [shape: f32[8,32], index: 5, kind: input, shape index: {}]   ;;  %s402_s6 = inlined_call_operand.vmem [shape: f32[8,1], index: 6, kind: input, shape index: {}]   ;;  %s403_s7 = inlined_call_operand.hbm [shape: f32[8,16], index: 7, kind: output, shape index: {}]  }
   0x1   :  { %v27_v0 = vld [vmem:[%s396_s0] sm:$0xff]  ;;  %v31_v2 = vld [vmem:[%s397_s1 + $0x18] sm:$0xff]  ;;  %v33_v4 = vld [vmem:[%s398_s2 + $0x8] sm:$0xff]  ;;  %257 = vset.pattern.permute.xlu1 %v285_v5  ;;  %256 = vset.pattern.permute.xlu0 %v285_v5 }
   0x2   :  { %v28_v1 = vld [vmem:[%s397_s1] sm:$0xff]  ;;  %84 = vmatpush.msra.mxu0 %v27_v0  ;;  %249 = vmatpush.msra.mxu2 %v27_v0  ;;  %v35_v3 = vld [vmem:[%s398_s2 + $0x18] sm:$0xff] }
   0x3   :  { %240 = vmatmul.msk.f32.vlgmr.msra.gmra.mxu0 %vm56_vm0, %v28_v1  ;;  %243 = vmatmul.msk.f32.vlgmr.msra.gmra.mxu2 %vm56_vm0, %v31_v2 }
   0x4   :  { %12 = vsyncpa [#allocation3], 0  ;;  %53 = vperm.xlu0 %256, %v35_v3   ;;  %43 = vperm.xlu1 %257, %v33_v4   ;;  %v29_v6 = vld [vmem:[%s397_s1 + $0x8] sm:$0xff]  ;;  %v34_v7 = vld [vmem:[%s398_s2 + $0x10] sm:$0xff]  ;;  %vm138_vm5 = vcmask 261120   ;;  %s286_s10 = smov [#allocation2]  }
   0x5   :  { %258 = vset.pattern.permute.xlu2 %v285_v5  ;;  %v32_v8 = vld [vmem:[%s398_s2] sm:$0xff]  ;;  %v30_v9 = vld [vmem:[%s397_s1 + $0x10] sm:$0xff]  ;;  %v115_v10 = vld [vmem:[%s400_s4 + $0x8] sm:$0xff]  ;;  %s229_s0 = sshll.u32 %s286_s10, 4  ;;  %s231_s13 = sshll.u32 %s403_s7, 4  ;;  %vm222_vm10 = vcmask 130048   ;;  %s230_s0 = int_to_ptr.vmem [resolvable:$true] %s229_s0  ;;  %s232_s13 = int_to_ptr.hbm [resolvable:$true] %s231_s13 }
   0x6   :  { %v114_v11 = vld [vmem:[%s400_s4] sm:$0xff]  ;;  %v117_v13 = vld [vmem:[%s400_s4 + $0x18] sm:$0xff]  ;;  %v116_v20 = vld [vmem:[%s400_s4 + $0x10] sm:$0xff] }
   0x7   :  { %135 = vperm.xlu2 %258, %v117_v13   ;;  %v193_v28 = vld [vmem:[%s402_s6] sm:$0xff]  ;;  %v112_v35 = vld [vmem:[%s399_s3 + $0x10] sm:$0xff]  ;;  %v111_v37 = vld [vmem:[%s399_s3 + $0x8] sm:$0xff] }
   0x8   :  { %v110_v34 = vld [vmem:[%s399_s3] sm:$0xff]  ;;  %v113_v38 = vld [vmem:[%s399_s3 + $0x18] sm:$0xff] }
   0x9   :  { %v192_v58 = vld [vmem:[%s401_s5] sm:$0xff] }
   0xb   :  { %241 = vmatmul.msk.f32.gmra.mxu0 %vm56_vm0, %v29_v6 }
   0xc   :  { %48 = vperm.xlu0 %256, %v34_v7   ;;  %38 = vperm.xlu1 %257, %v32_v8  }
   0xf   :  { %130 = vperm.xlu2 %258, %v116_v20  }
  0x13   :  { %242 = vmatmul.msk.f32.gmra.mxu0 %vm56_vm0, %v30_v9 }
  0x14   :  { %125 = vperm.xlu0 %256, %v115_v10   ;;  %120 = vperm.xlu1 %257, %v114_v11  }
  0x17   :  { %196 = vperm.xlu2 %258, %v193_v28  }
  0x61   :  { %v136_v39 = vpop.permute.xlu2 %135 }
  0x69   :  { %v131_v42 = vpop.permute.xlu2 %130 }
  0x71   :  { %v197_v60 = vpop.permute.xlu2 %196 }
  0x76   :  { %v44_v14 = vpop.permute.xlu1 %43  ;;  %v54_v15 = vpop.permute.xlu0 %53 }
  0x7e   :  { %v39_v22 = vpop.permute.xlu1 %38  ;;  %v49_v24 = vpop.permute.xlu0 %48 }
  0x80   :  { %v86_v12 = vpop.f32.mrf.mxu0 }
  0x81   :  { %v87_v26 = vadd.f32 %v86_v12, %v39_v22 }
  0x83   :  { %v102_v32 = vmul.f32 0.2, %v87_v26  ;;  %vm98_vm4 = vcmp.ge.f32.partialorder %v87_v26, 0.0 }
  0x85   :  { %v106_v36 = vsel %vm98_vm4, %v87_v26, %v102_v32 }
  0x86   :  { %v95_v16 = vpop.f32.mrf.mxu2  ;;  %v126_v45 = vpop.permute.xlu0 %125 }
  0x87   :  { %v96_v17 = vadd.f32 %v95_v16, %v54_v15  ;;  %v121_v49 = vpop.permute.xlu1 %120 }
  0x88   :  { %v89_v18 = vpop.f32.mrf.mxu0 }
  0x89   :  { %vm101_vm1 = vcmp.ge.f32.partialorder %v96_v17, 0.0  ;;  %v105_v19 = vmul.f32 0.2, %v96_v17  ;;  %v90_v23 = vadd.f32 %v89_v18, %v44_v14 }
  0x8b   :  { %v109_v21 = vsel %vm101_vm1, %v96_v17, %v105_v19  ;;  %v103_v30 = vmul.f32 0.2, %v90_v23  ;;  %vm99_vm3 = vcmp.ge.f32.partialorder %v90_v23, 0.0 }
  0x8c   :  { %163 = vmatpush.msra.mxu1 %v109_v21  ;;  %250 = vmatpush.msra.mxu3 %v109_v21 }
  0x8d   :  { %v107_v33 = vsel %vm99_vm3, %v90_v23, %v103_v30 }
  0x90   :  { %v92_v25 = vpop.f32.mrf.mxu0 }
  0x91   :  { %v93_v27 = vadd.f32 %v92_v25, %v49_v24 }
  0x93   :  { %vm100_vm2 = vcmp.ge.f32.partialorder %v93_v27, 0.0  ;;  %v104_v29 = vmul.f32 0.2, %v93_v27 }
  0x95   :  { %v108_v31 = vsel %vm100_vm2, %v93_v27, %v104_v29 }
  0x96   :  { %164 = vmatpush.msra.mxu1 %v108_v31  ;;  %251 = vmatpush.msra.mxu3 %v108_v31 }
  0x98   :  { %165 = vmatpush.msra.mxu1 %v107_v33  ;;  %252 = vmatpush.msra.mxu3 %v107_v33 }
  0x9a   :  { %166 = vmatpush.msra.mxu1 %v106_v36  ;;  %253 = vmatpush.msra.mxu3 %v106_v36 }
  0x9b   :  { %244 = vmatmul.msk.f32.vlgmr.msra.gmra.mxu1 %vm138_vm5, %v110_v34  ;;  %246 = vmatmul.msk.f32.vlgmr.msra.gmra.mxu3 %vm138_vm5, %v112_v35 }
  0xa3   :  { %245 = vmatmul.msk.f32.gmra.mxu1 %vm138_vm5, %v111_v37  ;;  %247 = vmatmul.msk.f32.gmra.mxu3 %vm138_vm5, %v113_v38 }
 0x118   :  { %v168_v40 = vpop.f32.mrf.mxu1 }
 0x119   :  { %v169_v50 = vadd.f32 %v168_v40, %v121_v49 }
 0x11b   :  { %v184_v56 = vmul.f32 0.2, %v169_v50  ;;  %vm180_vm9 = vcmp.ge.f32.partialorder %v169_v50, 0.0 }
 0x11d   :  { %v188_v59 = vsel %vm180_vm9, %v169_v50, %v184_v56 }
 0x11e   :  { %v174_v41 = vpop.f32.mrf.mxu3 }
 0x11f   :  { %v175_v44 = vadd.f32 %v174_v41, %v131_v42 }
 0x120   :  { %v171_v43 = vpop.f32.mrf.mxu1 }
 0x121   :  { %v172_v47 = vadd.f32 %v171_v43, %v126_v45  ;;  %v186_v52 = vmul.f32 0.2, %v175_v44  ;;  %vm182_vm7 = vcmp.ge.f32.partialorder %v175_v44, 0.0 }
 0x123   :  { %v185_v54 = vmul.f32 0.2, %v172_v47  ;;  %vm181_vm8 = vcmp.ge.f32.partialorder %v172_v47, 0.0  ;;  %v190_v55 = vsel %vm182_vm7, %v175_v44, %v186_v52 }
 0x125   :  { %v189_v57 = vsel %vm181_vm8, %v172_v47, %v185_v54 }
 0x126   :  { %v177_v46 = vpop.f32.mrf.mxu3 }
 0x127   :  { %v178_v48 = vadd.f32 %v177_v46, %v136_v39 }
 0x129   :  { %vm183_vm6 = vcmp.ge.f32.partialorder %v178_v48, 0.0  ;;  %v187_v51 = vmul.f32 0.2, %v178_v48 }
 0x12b   :  { %v191_v53 = vsel %vm183_vm6, %v178_v48, %v187_v51 }
 0x12c   :  { %214 = vmatpush.msrb.mxu2 %v191_v53 }
 0x12e   :  { %215 = vmatpush.msrb.mxu2 %v190_v55 }
 0x130   :  { %216 = vmatpush.msrb.mxu2 %v189_v57 }
 0x132   :  { %217 = vmatpush.msrb.mxu2 %v188_v59 }
 0x133   :  { %248 = vmatmul.msk.f32.vlgmr.msrb.gmra.mxu2 %vm138_vm5, %v192_v58 }
 0x1b6   :  { %v219_v61 = vpop.f32.mrf.mxu2 }
 0x1b7   :  { %v220_v62 = vadd.f32 %v219_v61, %v197_v60 }
 0x1b9   :  { %223 = vst.msk [vmem:[#allocation2] sm:$0xff] %vm222_vm10, %v220_v62 }
 0x1ba   :  { %234 = dma.vmem_to_hbm [thread:$0]  %s230_s0, 128, %s232_s13, [#allocation3]  }
 0x1bb   :  { %283 = dma.done.wait [#allocation3], 128  }
 0x1bc   :  { %284 = vsyncadd [#allocation3], 4294967168 }
 0x1bd   :  { %239 = vsyncpa [#allocation3], 1 }

</bundles_post_ra>
